<compile_context>
chip_gen: v7x
topology: tpu7x:2x2x1
jax: 0.10.0
libtpu: 0.0.40
codegen_flags: <defaults>
</compile_context>

<pallas_src>
import functools

import jax
import jax.numpy as jnp
from jax.experimental import pallas as pl
from jax.experimental.pallas import tpu as pltpu


# Safe on all generations: above the 16/32 MiB scoped defaults, below v7x's
# 64 MiB physical VMEM.  Sweep upward on v5e/v6e (128 MiB physical) if desired.
_VMEM_LIMIT_BYTES = 48 * 1024 * 1024


def _round_up(a, b):
    return (a + b - 1) // b * b


def _dconv_prelu_stats_kernel(xa_ref, xb_ref, w_ref, b_ref, alpha_ref,
                              y_ref, stats_ref, *,
                              kernel_size, dilation, t_tile,
                              mask_last, t_last_valid):
    """Fused depthwise conv + bias + PReLU + single-pass gLN sum / sum-of-squares.

    stats_ref is a (1, 2, 128) f32 accumulator block whose index is constant
    along the T ("arbitrary") axis; lanes hold per-lane partial sums that are
    reduced outside the kernel.
    """
    j = pl.program_id(1)

    @pl.when(j == 0)
    def _init():
        stats_ref[...] = jnp.zeros_like(stats_ref)

    halo = dilation * (kernel_size - 1)

    # Keep the conv window in the input dtype; the per-tap multiply against the
    # f32 weights promotes to f32 (conv accumulation stays f32).
    xa = xa_ref[0]                                            # (C, t_tile)
    if halo > 0:
        # Next tile's leading columns (narrow block) supply the right halo.
        window = jnp.concatenate([xa, xb_ref[0]], axis=-1)    # (C, t_tile + halo_blk)
    else:
        window = xa

    # Depthwise conv: out[c, t] = sum_k w[k, c] * window[c, t + k*dilation] + b[c]
    w = w_ref[...].astype(jnp.float32)                        # (K, C, 1)
    conv = w[0] * window[:, 0:t_tile]
    for k in range(1, kernel_size):
        off = k * dilation
        conv = conv + w[k] * window[:, off:off + t_tile]
    conv = conv + b_ref[...].astype(jnp.float32)              # (C, 1) broadcast

    # PReLU (single shared slope; kept (1,1) to avoid scalar extraction).
    alpha = alpha_ref[...].astype(jnp.float32)
    act = jnp.where(conv >= 0.0, conv, alpha * conv)          # (C, t_tile) f32

    y_ref[0] = act.astype(y_ref.dtype)

    def _accumulate(v):
        # Per-lane partial sums: only VPU adds/mults plus one tiny (C,128)
        # sublane reduce; single (2,128) store per step.
        n_lane_groups = t_tile // 128
        p1 = v[:, 0:128]
        p2 = p1 * p1
        for g in range(1, n_lane_groups):
            blk = v[:, g * 128:(g + 1) * 128]
            p1 = p1 + blk
            p2 = p2 + blk * blk
        lane_sum = jnp.sum(p1, axis=0, keepdims=True)         # (1, 128)
        lane_ssq = jnp.sum(p2, axis=0, keepdims=True)         # (1, 128)
        stats_ref[0] = stats_ref[0] + jnp.concatenate([lane_sum, lane_ssq], axis=0)

    if mask_last:
        last = j == pl.num_programs(1) - 1

        @pl.when(jnp.logical_not(last))
        def _full_tile():
            _accumulate(act)

        @pl.when(last)
        def _masked_tile():
            # Padded tail columns hold PReLU(bias) != 0 -> mask them out of the
            # gLN statistics (required for correctness; only on the last tile).
            col = jax.lax.broadcasted_iota(jnp.int32, act.shape, 1)
            _accumulate(jnp.where(col < t_last_valid, act, 0.0))
    else:
        _accumulate(act)


def _gln_apply_sconv_kernel(y_ref, w_ref, b_ref, o_ref):
    """Pointwise conv with the gLN scale/shift pre-folded into (w_eff, b_eff).

    Operands (y, w_eff) are in the compute dtype (bf16 by default) so the MXU
    runs native; accumulation and bias stay f32.
    """
    acc = jnp.dot(w_ref[0], y_ref[0], preferred_element_type=jnp.float32)
    o_ref[0] = (acc + b_ref[0].astype(jnp.float32)).astype(o_ref.dtype)


def ds_conv1d_forward(x, dconv_w, dconv_b, prelu_alpha, gamma, beta,
                      sconv_w, sconv_b, *, dilation=1, causal=False,
                      eps=1e-5, t_tile_target=1024,
                      compute_dtype=jnp.bfloat16):
    """Pallas forward of DsConv1D (norm='gLN').

    x: (N, C_in, T); dconv_w: (C_in, 1, K); dconv_b: (C_in,); prelu_alpha: scalar;
    gamma/beta: (C_in, 1); sconv_w: (C_out, C_in, 1); sconv_b: (C_out,).
    compute_dtype controls the dtype of the intermediate activation y and of the
    folded pointwise weights (bf16 default; pass jnp.float32 for bit-accuracy).
    """
    N, C, T = x.shape
    K = dconv_w.shape[-1]
    C_out = sconv_w.shape[0]
    P = dilation * (K - 1)
    halo = P

    if causal:
        p_left, t_out = P, T
    else:
        p_left = P // 2
        t_out = T + 2 * (P // 2) - P
    assert t_out > 0

    # Lane-dense T tiling (multiples of 128); last tile masked for the stats.
    halo_blk = _round_up(max(halo, 1), 128)
    t_tile = min(t_tile_target, _round_up(t_out, 128))
    t_tile = _round_up(max(t_tile, halo_blk), halo_blk)
    n_t = pl.cdiv(t_out, t_tile)
    t_pad = n_t * t_tile

    # Zero-pad just enough that every (tile + halo_blk) window read stays in bounds.
    xp_len = t_pad + halo_blk
    right_pad = xp_len - T - p_left
    assert right_pad >= 0
    xp = jnp.pad(x, ((0, 0), (0, 0), (p_left, right_pad)))

    w_t = jnp.transpose(dconv_w, (2, 0, 1)).astype(jnp.float32)   # (K, C, 1)
    b_2d = dconv_b.reshape(C, 1).astype(jnp.float32)
    alpha_2d = jnp.asarray(prelu_alpha, dtype=jnp.float32).reshape(1, 1)

    mask_last = (t_out % t_tile) != 0
    t_last_valid = t_out - (n_t - 1) * t_tile

    itemsize = x.dtype.itemsize
    y_itemsize = jnp.dtype(compute_dtype).itemsize
    cost1 = pl.CostEstimate(
        flops=int(N * C * t_pad * (2 * K + 4)),
        transcendentals=0,
        bytes_accessed=int(N * C * t_pad * itemsize
                           + N * n_t * C * halo_blk * itemsize
                           + N * C * t_pad * y_itemsize + N * 2 * 128 * 4))

    kernel1 = functools.partial(
        _dconv_prelu_stats_kernel, kernel_size=K, dilation=dilation,
        t_tile=t_tile, mask_last=mask_last, t_last_valid=t_last_valid)

    y, stats = pl.pallas_call(
        kernel1,
        out_shape=(jax.ShapeDtypeStruct((N, C, t_pad), compute_dtype),
                   jax.ShapeDtypeStruct((N, 2, 128), jnp.float32)),
        grid_spec=pltpu.PrefetchScalarGridSpec(
            num_scalar_prefetch=0,
            grid=(N, n_t),
            in_specs=[
                pl.BlockSpec((1, C, t_tile), lambda n, j: (n, 0, j)),
                pl.BlockSpec((1, C, halo_blk),
                             lambda n, j: (n, 0, (j + 1) * (t_tile // halo_blk))),
                pl.BlockSpec((K, C, 1), lambda n, j: (0, 0, 0)),   # resident params
                pl.BlockSpec((C, 1), lambda n, j: (0, 0)),
                pl.BlockSpec((1, 1), lambda n, j: (0, 0)),
            ],
            out_specs=[
                pl.BlockSpec((1, C, t_tile), lambda n, j: (n, 0, j)),
                pl.BlockSpec((1, 2, 128), lambda n, j: (n, 0, 0)),  # stats accumulator
            ],
        ),
        compiler_params=pltpu.CompilerParams(
            dimension_semantics=("parallel", "arbitrary"),
            vmem_limit_bytes=_VMEM_LIMIT_BYTES),
        cost_estimate=cost1,
    )(xp, xp, w_t, b_2d, alpha_2d)

    # ---- parameter-sized glue: finish gLN stats, fold affine into the 1x1 conv.
    cnt = jnp.float32(C * t_out)
    s_tot = jnp.sum(stats[:, 0, :], axis=-1)                           # (N,)
    ss_tot = jnp.sum(stats[:, 1, :], axis=-1)                          # (N,)
    mean = s_tot / cnt
    var = jnp.maximum(ss_tot / cnt - mean * mean, 0.0)
    inv_std = jax.lax.rsqrt(var + jnp.float32(eps))                    # (N,)
    scale = gamma[None, :, 0].astype(jnp.float32) * inv_std[:, None]   # (N, C)
    shift = beta[None, :, 0].astype(jnp.float32) - mean[:, None] * scale
    w_s = sconv_w[:, :, 0].astype(jnp.float32)                         # (C_out, C)
    w_eff = (w_s[None, :, :] * scale[:, None, :]).astype(compute_dtype)  # (N, C_out, C)
    b_eff = (jnp.einsum("oc,nc->no", w_s, shift)
             + sconv_b[None, :].astype(jnp.float32))[:, :, None]       # (N, C_out, 1) f32

    cost2 = pl.CostEstimate(
        flops=int(2 * N * C_out * C * t_pad),
        transcendentals=0,
        bytes_accessed=int(N * C * t_pad * y_itemsize + N * C_out * C * y_itemsize
                           + N * C_out * t_pad * itemsize))

    out = pl.pallas_call(
        _gln_apply_sconv_kernel,
        out_shape=jax.ShapeDtypeStruct((N, C_out, t_pad), x.dtype),
        grid_spec=pltpu.PrefetchScalarGridSpec(
            num_scalar_prefetch=0,
            grid=(N, n_t),
            in_specs=[
                pl.BlockSpec((1, C, t_tile), lambda n, j: (n, 0, j)),
                pl.BlockSpec((1, C_out, C), lambda n, j: (n, 0, 0)),
                pl.BlockSpec((1, C_out, 1), lambda n, j: (n, 0, 0)),
            ],
            out_specs=pl.BlockSpec((1, C_out, t_tile), lambda n, j: (n, 0, j)),
        ),
        compiler_params=pltpu.CompilerParams(
            dimension_semantics=("parallel", "parallel"),
            vmem_limit_bytes=_VMEM_LIMIT_BYTES),
        cost_estimate=cost2,
    )(y, w_eff, b_eff)

    return out[:, :, :t_out]


def reference_ds_conv1d(x, dconv_w, dconv_b, prelu_alpha, gamma, beta,
                        sconv_w, sconv_b, *, dilation, causal, eps):
    """Pure-JAX reference matching the PyTorch DsConv1D (norm='gLN') forward."""
    N, C, T = x.shape
    K = dconv_w.shape[-1]
    P = dilation * (K - 1)
    pad = P if causal else P // 2
    y = jax.lax.conv_general_dilated(
        x, dconv_w, window_strides=(1,), padding=[(pad, pad)],
        rhs_dilation=(dilation,), dimension_numbers=("NCH", "OIH", "NCH"),
        feature_group_count=C)
    y = y + dconv_b[None, :, None]
    if causal and P > 0:
        y = y[:, :, :-P]
    y = jnp.where(y >= 0, y, prelu_alpha * y)                      # PReLU
    mean = jnp.mean(y, axis=(1, 2), keepdims=True)                 # gLN
    var = jnp.mean((y - mean) ** 2, axis=(1, 2), keepdims=True)
    y = gamma[None] * (y - mean) / jnp.sqrt(var + eps) + beta[None]
    return jnp.einsum("oc,nct->not", sconv_w[:, :, 0], y) + sconv_b[None, :, None]


def _run_case(name, *, N, C_in, C_out, T, K, dilation, causal, eps,
              compute_dtype, atol, rtol, t_tile_target=1024, seed=0):
    key = jax.random.PRNGKey(seed)
    k = jax.random.split(key, 7)

    x = jax.random.normal(k[0], (N, C_in, T), dtype=jnp.float32)
    dconv_w = 0.3 * jax.random.normal(k[1], (C_in, 1, K), dtype=jnp.float32)
    dconv_b = 0.1 * jax.random.normal(k[2], (C_in,), dtype=jnp.float32)
    prelu_alpha = jnp.float32(0.25)                      # PyTorch PReLU default init
    gamma = 1.0 + 0.1 * jax.random.normal(k[3], (C_in, 1), dtype=jnp.float32)
    beta = 0.1 * jax.random.normal(k[4], (C_in, 1), dtype=jnp.float32)
    sconv_w = 0.3 * jax.random.normal(k[5], (C_out, C_in, 1), dtype=jnp.float32)
    sconv_b = 0.1 * jax.random.normal(k[6], (C_out,), dtype=jnp.float32)

    forward = jax.jit(functools.partial(
        ds_conv1d_forward, dilation=dilation, causal=causal, eps=eps,
        t_tile_target=t_tile_target, compute_dtype=compute_dtype))
    out = jax.block_until_ready(
        forward(x, dconv_w, dconv_b, prelu_alpha, gamma, beta, sconv_w, sconv_b))

    ref = reference_ds_conv1d(x, dconv_w, dconv_b, prelu_alpha, gamma, beta,
                              sconv_w, sconv_b, dilation=dilation,
                              causal=causal, eps=eps)
    assert out.shape == ref.shape, (name, out.shape, ref.shape)
    max_err = jnp.max(jnp.abs(out - ref))
    assert jnp.allclose(out, ref, atol=atol, rtol=rtol), (
        f"{name}: max abs err {max_err}")


if __name__ == "__main__":
    # Strict f32 checks exercise the structural paths (halo, stats accumulation,
    # last-tile masking, causal slicing, affine folding); the bf16 check runs the
    # default performance path with bf16-appropriate tolerances.
    _run_case("basic_f32", N=2, C_in=4, C_out=6, T=16, K=3, dilation=1,
              causal=False, eps=1e-5, compute_dtype=jnp.float32,
              atol=1e-3, rtol=1e-3)
    _run_case("basic_bf16", N=2, C_in=4, C_out=6, T=16, K=3, dilation=1,
              causal=False, eps=1e-5, compute_dtype=jnp.bfloat16,
              atol=5e-2, rtol=5e-2)
    _run_case("causal_dilated_f32", N=2, C_in=4, C_out=6, T=32, K=3, dilation=2,
              causal=True, eps=1e-5, compute_dtype=jnp.float32,
              atol=1e-3, rtol=1e-3)
    _run_case("multitile_f32", N=1, C_in=5, C_out=7, T=200, K=3, dilation=2,
              causal=False, eps=1e-5, compute_dtype=jnp.float32,
              atol=1e-3, rtol=1e-3, t_tile_target=128)
    print("KERNEL_OK")
</pallas_src>

<mosaic_0001>
module attributes {stable_mosaic.version = 11 : i64} {
  func.func @_dconv_prelu_stats_kernel(%arg0: i32, %arg1: i32, %arg2: memref<1x4x128xf32, #tpu.memory_space<vmem>>, %arg3: memref<1x4x128xf32, #tpu.memory_space<vmem>>, %arg4: memref<3x4x1xf32, #tpu.memory_space<vmem>>, %arg5: memref<4x1xf32, #tpu.memory_space<vmem>>, %arg6: memref<1x1xf32, #tpu.memory_space<vmem>>, %arg7: memref<1x4x128xf32, #tpu.memory_space<vmem>>, %arg8: memref<1x2x128xf32, #tpu.memory_space<vmem>>) attributes {dimension_semantics = [#tpu.dimension_semantics<parallel>, #tpu.dimension_semantics<arbitrary>], iteration_bounds = array<i64: 2, 1>, scalar_prefetch = 0 : i64, scratch_operands = 0 : i64, tpu.core_type = #tpu.core_type<tc>, window_params = [{transform_indices = @transform_0, window_bounds = array<i64: 1, 4, 128>}, {transform_indices = @transform_1, window_bounds = array<i64: 1, 4, 128>}, {pipeline_mode = #tpu.pipeline_mode<synchronous>, transform_indices = @transform_2, window_bounds = array<i64: 3, 4, 1>}, {pipeline_mode = #tpu.pipeline_mode<synchronous>, transform_indices = @transform_3, window_bounds = array<i64: 4, 1>}, {pipeline_mode = #tpu.pipeline_mode<synchronous>, transform_indices = @transform_4, window_bounds = array<i64: 1, 1>}, {transform_indices = @transform_5, window_bounds = array<i64: 1, 4, 128>}, {transform_indices = @transform_6, window_bounds = array<i64: 1, 2, 128>}]} {
    %c0_i32 = arith.constant 0 : i32
    %0 = arith.cmpi eq, %arg1, %c0_i32 : i32
    %1 = arith.extui %0 : i1 to i32
    %c0_i32_0 = arith.constant 0 : i32
    %2 = arith.cmpi ne, %1, %c0_i32_0 : i32
    scf.if %2 {
      %cst_19 = arith.constant 0.000000e+00 : f32
      %44 = vector.broadcast %cst_19 : f32 to vector<1x2x128xf32>
      %c0_20 = arith.constant 0 : index
      %c0_21 = arith.constant 0 : index
      %c0_22 = arith.constant 0 : index
      %45 = vector.load %arg8[%c0_20, %c0_21, %c0_22] : memref<1x2x128xf32, #tpu.memory_space<vmem>>, vector<1x2x128xf32>
      tpu.vector_store %arg8[%c0_20, %c0_21, %c0_22], %44 {strides = array<i32>} : memref<1x2x128xf32, #tpu.memory_space<vmem>>, vector<1x2x128xf32>,
    } else {
    }
    %c0 = arith.constant 0 : index
    %c0_1 = arith.constant 0 : index
    %c0_2 = arith.constant 0 : index
    %3 = vector.load %arg2[%c0, %c0_1, %c0_2] : memref<1x4x128xf32, #tpu.memory_space<vmem>>, vector<1x4x128xf32>
    %4 = vector.shape_cast %3 : vector<1x4x128xf32> to vector<4x128xf32>
    %c0_3 = arith.constant 0 : index
    %c0_4 = arith.constant 0 : index
    %c0_5 = arith.constant 0 : index
    %5 = vector.load %arg3[%c0_3, %c0_4, %c0_5] : memref<1x4x128xf32, #tpu.memory_space<vmem>>, vector<1x4x128xf32>
    %6 = vector.shape_cast %5 : vector<1x4x128xf32> to vector<4x128xf32>
    %7 = tpu.concatenate %4, %6 in 1 : vector<4x128xf32>, vector<4x128xf32> -> vector<4x256xf32>
    %c0_6 = arith.constant 0 : index
    %c0_7 = arith.constant 0 : index
    %c0_8 = arith.constant 0 : index
    %8 = vector.load %arg4[%c0_6, %c0_7, %c0_8] : memref<3x4x1xf32, #tpu.memory_space<vmem>>, vector<3x4x1xf32>
    %9 = vector.extract_strided_slice %8 {offsets = [0, 0, 0], sizes = [1, 4, 1], strides = [1, 1, 1]} : vector<3x4x1xf32> to vector<1x4x1xf32>
    %10 = vector.shape_cast %9 : vector<1x4x1xf32> to vector<4x1xf32>
    %11 = vector.extract_strided_slice %7 {offsets = [0, 0], sizes = [4, 128], strides = [1, 1]} : vector<4x256xf32> to vector<4x128xf32>
    %12 = vector.broadcast %10 : vector<4x1xf32> to vector<4x128xf32>
    %13 = arith.mulf %12, %11 : vector<4x128xf32>
    %14 = vector.extract_strided_slice %8 {offsets = [1, 0, 0], sizes = [1, 4, 1], strides = [1, 1, 1]} : vector<3x4x1xf32> to vector<1x4x1xf32>
    %15 = vector.shape_cast %14 : vector<1x4x1xf32> to vector<4x1xf32>
    %16 = vector.extract_strided_slice %7 {offsets = [0, 1], sizes = [4, 128], strides = [1, 1]} : vector<4x256xf32> to vector<4x128xf32>
    %17 = vector.broadcast %15 : vector<4x1xf32> to vector<4x128xf32>
    %18 = arith.mulf %17, %16 : vector<4x128xf32>
    %19 = arith.addf %13, %18 : vector<4x128xf32>
    %20 = vector.extract_strided_slice %8 {offsets = [2, 0, 0], sizes = [1, 4, 1], strides = [1, 1, 1]} : vector<3x4x1xf32> to vector<1x4x1xf32>
    %21 = vector.shape_cast %20 : vector<1x4x1xf32> to vector<4x1xf32>
    %22 = vector.extract_strided_slice %7 {offsets = [0, 2], sizes = [4, 128], strides = [1, 1]} : vector<4x256xf32> to vector<4x128xf32>
    %23 = vector.broadcast %21 : vector<4x1xf32> to vector<4x128xf32>
    %24 = arith.mulf %23, %22 : vector<4x128xf32>
    %25 = arith.addf %19, %24 : vector<4x128xf32>
    %c0_9 = arith.constant 0 : index
    %c0_10 = arith.constant 0 : index
    %26 = vector.load %arg5[%c0_9, %c0_10] : memref<4x1xf32, #tpu.memory_space<vmem>>, vector<4x1xf32>
    %27 = vector.broadcast %26 : vector<4x1xf32> to vector<4x128xf32>
    %28 = arith.addf %25, %27 : vector<4x128xf32>
    %c0_11 = arith.constant 0 : index
    %c0_12 = arith.constant 0 : index
    %29 = vector.load %arg6[%c0_11, %c0_12] : memref<1x1xf32, #tpu.memory_space<vmem>>, vector<1x1xf32>
    %cst = arith.constant 0.000000e+00 : f32
    %30 = vector.broadcast %cst : f32 to vector<4x128xf32>
    %31 = arith.cmpf oge, %28, %30 : vector<4x128xf32>
    %32 = vector.broadcast %29 : vector<1x1xf32> to vector<4x128xf32>
    %33 = arith.mulf %32, %28 : vector<4x128xf32>
    %34 = arith.select %31, %28, %33 : vector<4x128xi1>, vector<4x128xf32>
    %c0_13 = arith.constant 0 : index
    %c0_14 = arith.constant 0 : index
    %c0_15 = arith.constant 0 : index
    %35 = vector.load %arg7[%c0_13, %c0_14, %c0_15] : memref<1x4x128xf32, #tpu.memory_space<vmem>>, vector<1x4x128xf32>
    %36 = vector.shape_cast %35 : vector<1x4x128xf32> to vector<4x128xf32>
    %37 = vector.shape_cast %34 : vector<4x128xf32> to vector<1x4x128xf32>
    tpu.vector_store %arg7[%c0_13, %c0_14, %c0_15], %37 {strides = array<i32>} : memref<1x4x128xf32, #tpu.memory_space<vmem>>, vector<1x4x128xf32>,
    %c0_i32_16 = arith.constant 0 : i32
    %38 = arith.cmpi eq, %arg1, %c0_i32_16 : i32
    %true = arith.constant true
    %39 = arith.xori %38, %true : i1
    %40 = arith.extui %39 : i1 to i32
    %c0_i32_17 = arith.constant 0 : i32
    %41 = arith.cmpi ne, %40, %c0_i32_17 : i32
    scf.if %41 {
      %44 = arith.mulf %34, %34 : vector<4x128xf32>
      %cst_19 = arith.constant dense<0.000000e+00> : vector<128xf32>
      %45 = vector.multi_reduction <add>, %34, %cst_19 [0] : vector<4x128xf32> to vector<128xf32>
      %46 = vector.shape_cast %45 : vector<128xf32> to vector<1x128xf32>
      %cst_20 = arith.constant dense<0.000000e+00> : vector<128xf32>
      %47 = vector.multi_reduction <add>, %44, %cst_20 [0] : vector<4x128xf32> to vector<128xf32>
      %48 = vector.shape_cast %47 : vector<128xf32> to vector<1x128xf32>
      %c0_21 = arith.constant 0 : index
      %c0_22 = arith.constant 0 : index
      %c0_23 = arith.constant 0 : index
      %49 = vector.load %arg8[%c0_21, %c0_22, %c0_23] : memref<1x2x128xf32, #tpu.memory_space<vmem>>, vector<1x2x128xf32>
      %50 = vector.shape_cast %49 : vector<1x2x128xf32> to vector<2x128xf32>
      %51 = tpu.concatenate %46, %48 in 0 : vector<1x128xf32>, vector<1x128xf32> -> vector<2x128xf32>
      %52 = arith.addf %50, %51 : vector<2x128xf32>
      %c0_24 = arith.constant 0 : index
      %c0_25 = arith.constant 0 : index
      %c0_26 = arith.constant 0 : index
      %53 = vector.load %arg8[%c0_24, %c0_25, %c0_26] : memref<1x2x128xf32, #tpu.memory_space<vmem>>, vector<1x2x128xf32>
      %54 = vector.shape_cast %53 : vector<1x2x128xf32> to vector<2x128xf32>
      %55 = vector.shape_cast %52 : vector<2x128xf32> to vector<1x2x128xf32>
      tpu.vector_store %arg8[%c0_24, %c0_25, %c0_26], %55 {strides = array<i32>} : memref<1x2x128xf32, #tpu.memory_space<vmem>>, vector<1x2x128xf32>,
    } else {
    }
    %42 = arith.extui %38 : i1 to i32
    %c0_i32_18 = arith.constant 0 : i32
    %43 = arith.cmpi ne, %42, %c0_i32_18 : i32
    scf.if %43 {
      %44 = tpu.iota {dimensions = array<i32: 1>} : vector<4x128xi32>
      %c16_i32 = arith.constant 16 : i32
      %45 = vector.broadcast %c16_i32 : i32 to vector<4x128xi32>
      %46 = arith.cmpi slt, %44, %45 : vector<4x128xi32>
      %cst_19 = arith.constant 0.000000e+00 : f32
      %47 = vector.broadcast %cst_19 : f32 to vector<4x128xf32>
      %48 = arith.select %46, %34, %47 : vector<4x128xi1>, vector<4x128xf32>
      %49 = arith.mulf %48, %48 : vector<4x128xf32>
      %cst_20 = arith.constant dense<0.000000e+00> : vector<128xf32>
      %50 = vector.multi_reduction <add>, %48, %cst_20 [0] : vector<4x128xf32> to vector<128xf32>
      %51 = vector.shape_cast %50 : vector<128xf32> to vector<1x128xf32>
      %cst_21 = arith.constant dense<0.000000e+00> : vector<128xf32>
      %52 = vector.multi_reduction <add>, %49, %cst_21 [0] : vector<4x128xf32> to vector<128xf32>
      %53 = vector.shape_cast %52 : vector<128xf32> to vector<1x128xf32>
      %c0_22 = arith.constant 0 : index
      %c0_23 = arith.constant 0 : index
      %c0_24 = arith.constant 0 : index
      %54 = vector.load %arg8[%c0_22, %c0_23, %c0_24] : memref<1x2x128xf32, #tpu.memory_space<vmem>>, vector<1x2x128xf32>
      %55 = vector.shape_cast %54 : vector<1x2x128xf32> to vector<2x128xf32>
      %56 = tpu.concatenate %51, %53 in 0 : vector<1x128xf32>, vector<1x128xf32> -> vector<2x128xf32>
      %57 = arith.addf %55, %56 : vector<2x128xf32>
      %c0_25 = arith.constant 0 : index
      %c0_26 = arith.constant 0 : index
      %c0_27 = arith.constant 0 : index
      %58 = vector.load %arg8[%c0_25, %c0_26, %c0_27] : memref<1x2x128xf32, #tpu.memory_space<vmem>>, vector<1x2x128xf32>
      %59 = vector.shape_cast %58 : vector<1x2x128xf32> to vector<2x128xf32>
      %60 = vector.shape_cast %57 : vector<2x128xf32> to vector<1x2x128xf32>
      tpu.vector_store %arg8[%c0_25, %c0_26, %c0_27], %60 {strides = array<i32>} : memref<1x2x128xf32, #tpu.memory_space<vmem>>, vector<1x2x128xf32>,
    } else {
    }
    return
  }
  func.func @transform_0(%arg0: i32, %arg1: i32) -> (i32, i32, i32) {
    %c0_i32 = arith.constant 0 : i32
    %c0_i32_0 = arith.constant 0 : i32
    return %arg0, %c0_i32, %arg1 : i32, i32, i32
  }
  func.func @transform_1(%arg0: i32, %arg1: i32) -> (i32, i32, i32) {
    %c1_i32 = arith.constant 1 : i32
    %0 = arith.addi %arg1, %c1_i32 : i32
    %c1_i32_0 = arith.constant 1 : i32
    %1 = arith.muli %0, %c1_i32_0 : i32
    %c0_i32 = arith.constant 0 : i32
    %c0_i32_1 = arith.constant 0 : i32
    return %arg0, %c0_i32, %1 : i32, i32, i32
  }
  func.func @transform_2(%arg0: i32, %arg1: i32) -> (i32, i32, i32) {
    %c0_i32 = arith.constant 0 : i32
    %c0_i32_0 = arith.constant 0 : i32
    %c0_i32_1 = arith.constant 0 : i32
    %c0_i32_2 = arith.constant 0 : i32
    return %c0_i32, %c0_i32_0, %c0_i32_1 : i32, i32, i32
  }
  func.func @transform_3(%arg0: i32, %arg1: i32) -> (i32, i32) {
    %c0_i32 = arith.constant 0 : i32
    %c0_i32_0 = arith.constant 0 : i32
    %c0_i32_1 = arith.constant 0 : i32
    return %c0_i32, %c0_i32_0 : i32, i32
  }
  func.func @transform_4(%arg0: i32, %arg1: i32) -> (i32, i32) {
    %c0_i32 = arith.constant 0 : i32
    %c0_i32_0 = arith.constant 0 : i32
    %c0_i32_1 = arith.constant 0 : i32
    return %c0_i32, %c0_i32_0 : i32, i32
  }
  func.func @transform_5(%arg0: i32, %arg1: i32) -> (i32, i32, i32) {
    %c0_i32 = arith.constant 0 : i32
    %c0_i32_0 = arith.constant 0 : i32
    return %arg0, %c0_i32, %arg1 : i32, i32, i32
  }
  func.func @transform_6(%arg0: i32, %arg1: i32) -> (i32, i32, i32) {
    %c0_i32 = arith.constant 0 : i32
    %c0_i32_0 = arith.constant 0 : i32
    %c0_i32_1 = arith.constant 0 : i32
    return %arg0, %c0_i32, %c0_i32_0 : i32, i32, i32
  }
}

module attributes {stable_mosaic.version = 11 : i64} {
  func.func @_gln_apply_sconv_kernel(%arg0: i32, %arg1: i32, %arg2: memref<1x4x128xf32, #tpu.memory_space<vmem>>, %arg3: memref<1x6x4xf32, #tpu.memory_space<vmem>>, %arg4: memref<1x6x1xf32, #tpu.memory_space<vmem>>, %arg5: memref<1x6x128xf32, #tpu.memory_space<vmem>>) attributes {dimension_semantics = [#tpu.dimension_semantics<parallel>, #tpu.dimension_semantics<parallel>], iteration_bounds = array<i64: 2, 1>, scalar_prefetch = 0 : i64, scratch_operands = 0 : i64, tpu.core_type = #tpu.core_type<tc>, window_params = [{transform_indices = @transform_0, window_bounds = array<i64: 1, 4, 128>}, {transform_indices = @transform_1, window_bounds = array<i64: 1, 6, 4>}, {transform_indices = @transform_2, window_bounds = array<i64: 1, 6, 1>}, {transform_indices = @transform_3, window_bounds = array<i64: 1, 6, 128>}]} {
    %c0 = arith.constant 0 : index
    %c0_0 = arith.constant 0 : index
    %c0_1 = arith.constant 0 : index
    %0 = vector.load %arg3[%c0, %c0_0, %c0_1] : memref<1x6x4xf32, #tpu.memory_space<vmem>>, vector<1x6x4xf32>
    %1 = vector.shape_cast %0 : vector<1x6x4xf32> to vector<6x4xf32>
    %c0_2 = arith.constant 0 : index
    %c0_3 = arith.constant 0 : index
    %c0_4 = arith.constant 0 : index
    %2 = vector.load %arg2[%c0_2, %c0_3, %c0_4] : memref<1x4x128xf32, #tpu.memory_space<vmem>>, vector<1x4x128xf32>
    %3 = vector.shape_cast %2 : vector<1x4x128xf32> to vector<4x128xf32>
    %cst = arith.constant dense<0.000000e+00> : vector<6x128xf32>
    %4 = tpu.matmul %1, %3, %cst {dimension_numbers = #tpu.dot_dimension_numbers<[1], [0], [0], [1], [0, 0, 1, 1], [], []>} : vector<6x4xf32>, vector<4x128xf32>, vector<6x128xf32> -> vector<6x128xf32>
    %c0_5 = arith.constant 0 : index
    %c0_6 = arith.constant 0 : index
    %c0_7 = arith.constant 0 : index
    %5 = vector.load %arg4[%c0_5, %c0_6, %c0_7] : memref<1x6x1xf32, #tpu.memory_space<vmem>>, vector<1x6x1xf32>
    %6 = vector.shape_cast %5 : vector<1x6x1xf32> to vector<6x1xf32>
    %7 = vector.broadcast %6 : vector<6x1xf32> to vector<6x128xf32>
    %8 = arith.addf %4, %7 : vector<6x128xf32>
    %c0_8 = arith.constant 0 : index
    %c0_9 = arith.constant 0 : index
    %c0_10 = arith.constant 0 : index
    %9 = vector.load %arg5[%c0_8, %c0_9, %c0_10] : memref<1x6x128xf32, #tpu.memory_space<vmem>>, vector<1x6x128xf32>
    %10 = vector.shape_cast %9 : vector<1x6x128xf32> to vector<6x128xf32>
    %11 = vector.shape_cast %8 : vector<6x128xf32> to vector<1x6x128xf32>
    tpu.vector_store %arg5[%c0_8, %c0_9, %c0_10], %11 {strides = array<i32>} : memref<1x6x128xf32, #tpu.memory_space<vmem>>, vector<1x6x128xf32>,
    return
  }
  func.func @transform_0(%arg0: i32, %arg1: i32) -> (i32, i32, i32) {
    %c0_i32 = arith.constant 0 : i32
    %c0_i32_0 = arith.constant 0 : i32
    return %arg0, %c0_i32, %arg1 : i32, i32, i32
  }
  func.func @transform_1(%arg0: i32, %arg1: i32) -> (i32, i32, i32) {
    %c0_i32 = arith.constant 0 : i32
    %c0_i32_0 = arith.constant 0 : i32
    %c0_i32_1 = arith.constant 0 : i32
    return %arg0, %c0_i32, %c0_i32_0 : i32, i32, i32
  }
  func.func @transform_2(%arg0: i32, %arg1: i32) -> (i32, i32, i32) {
    %c0_i32 = arith.constant 0 : i32
    %c0_i32_0 = arith.constant 0 : i32
    %c0_i32_1 = arith.constant 0 : i32
    return %arg0, %c0_i32, %c0_i32_0 : i32, i32, i32
  }
  func.func @transform_3(%arg0: i32, %arg1: i32) -> (i32, i32, i32) {
    %c0_i32 = arith.constant 0 : i32
    %c0_i32_0 = arith.constant 0 : i32
    return %arg0, %c0_i32, %arg1 : i32, i32, i32
  }
}

</mosaic_0001>

<bundles_post_ra>
// kernel: ds_conv1d_forward.2
= control target key start
LH: loop header
LB: loop body
LE: loop exit
PB: predicated region body
PF: predicated region fallthrough
CT: control target
= control target key end

     0   :  { %s696_s23 = smov 0   ;;  %s698_s24 = smov 0   ;;  %s757_s0 = inlined_call_operand.vmem [shape: f32[2,4,256], index: 0, kind: input, shape index: {}, may-alias: {0,1}]   ;;  %s758_s1 = inlined_call_operand.vmem [shape: f32[2,4,256], index: 1, kind: input, shape index: {}, may-alias: {0,1}]   ;;  %s759_s2 = inlined_call_operand.vmem [shape: f32[3,4,1], index: 2, kind: input, shape index: {}]   ;;  %s760_s3 = inlined_call_operand.vmem [shape: f32[4,1], index: 3, kind: input, shape index: {}]   ;;  %s761_s4 = inlined_call_operand.<no memory space> [shape: f32[1,1], index: 4, kind: input, shape index: {}]   ;;  %s762_s5 = inlined_call_operand.vmem [shape: f32[2,4,128], index: 5, kind: output, shape index: {0}]   ;;  %s763_s6 = inlined_call_operand.vmem [shape: f32[2,2,128], index: 6, kind: output, shape index: {1}]  }
   0x1   :  { %v12_v0 = vstv %s761_s4  ;;  %s700_s25 = smov 0  }
   0x2   :  { %13 = vst [vmem:[#allocation2] sm:$0x1] %v12_v0 }
   0x3 LB: > { %s31_s4 = sadd.s32 1, %s648_s24  ;;  %p586_p0 = scmp.ge.s32.totalorder %s652_s25, 1  ;;  %s652_s25 = sphi %s700_s25, %s19_s25   ;;  %s648_s24 = sphi %s698_s24, %s765_s24   ;;  %s644_s23 = sphi %s696_s23, %s764_s23  }
   0x4   : > { %p33_p1 = scmp.ge.s32.totalorder %s31_s4, 2  ;;  %p255_p2 = scmp.lt.s32.totalorder %s652_s25, 3 }
   0x6   : > { %s767_s4 = smov (%p33_p1, %s31_s4), 0  ;;  %p256_p3 = pnand %p586_p0, %p255_p2 }
   0x7   : > { %v340_v1 = vld [vmem:[%s759_s2 + $0x4] sm:$0xf] (!%p256_p3)  ;;  %p303_p4 = scmp.lt.s32.totalorder (!%p256_p3), %s644_s23, 1  ;;  %v654_v2 = vmov (!%p256_p3), 0   ;;  %v339_v3 = vld [vmem:[%s759_s2] sm:$0xf] (!%p256_p3)  ;;  %v431_v23 = vlaneseq (!%p256_p3) }
   0x8   : > { %259 = sbr.rel (%p256_p3) target bundleno = 286 (0x11e), region = 40  ;;  %628 = vset.pattern.permute.xlu0 (!%p256_p3), %v654_v2  ;;  %629 = vset.pattern.permute.xlu1 (!%p256_p3), %v654_v2  ;;  %v341_v4 = vld [vmem:[%s759_s2 + $0x8] sm:$0xf] (!%p256_p3)  ;;  %v382_v5 = vld [vmem:[%s760_s3] sm:$0xf] (!%p256_p3)  ;;  %v655_v7 = vmov (!%p256_p3), 0.0  }
   0x9   : > { %350 = vperm.xlu0 (!%p256_p3), %628, %v340_v1   ;;  %344 = vperm.xlu1 (!%p256_p3), %629, %v339_v3   ;;  %v593_v6 = vld [vmem:[#allocation2] ss:$0 sm:$0xff] (!%p256_p3)  ;;  %s656_s22 = smov (!%p256_p3), 127   ;;  %s657_s26 = smov (!%p256_p3), 126   ;;  %vm361_vm0 = vcmask (!%p256_p3), 1039360   ;;  %vm378_vm1 = vcmask (!%p256_p3), 1031168  }
   0xa   : > { %v432_v28 = vand.u32 (!%p256_p3), 127, %v431_v23  ;;  %vm436_vm4 = vcmask (!%p256_p3), 1043456   ;;  %vm452_vm5 = vcmask (!%p256_p3), 1040384  }
   0xc   : > { %vm433_vm2 = vcmp.lt.s32.totalorder (!%p256_p3), %v432_v28, 16 }
   0xd   : > { %367 = vperm.xlu0 (!%p256_p3), %628, %v341_v4   ;;  %385 = vperm.xlu1 (!%p256_p3), %629, %v382_v5  }
   0xf   : > { %s769_s23 = smov (!%p303_p4, %s644_s23), 1 }
  0x10   : > { %s592_s10 = sshll.u32 %s769_s23, 1  ;;  %s596_s14 = sshll.u32 %s769_s23, 3 }
  0x11   : > { %s732_s13 = scalar_lea.vmem %s763_s6, %s592_s10  ;;  %397 = vperm.xlu0 %628, %v593_v6   ;;  %s598_s15 = sadd.s32 4, %s596_s14 }
  0x12   : > { %336 = vst [vmem:[%s732_s13] sm:$0x3] %v655_v7  ;;  %s310_s18 = scalar_lea.vmem %s757_s0, %s596_s14  ;;  %s319_s21 = scalar_lea.vmem %s758_s1, %s598_s15 }
  0x13   : > { %v337_v8 = vld [vmem:[%s310_s18] sm:$0xf]  ;;  %s591_s27 = sshll.u32 %s769_s23, 2 }
  0x14   : > { %v338_v9 = vld [vmem:[%s319_s21] sm:$0xf]  ;;  %s327_s30 = scalar_lea.vmem %s762_s5, %s591_s27 }
  0x19   : > { %v451_v47 = vld [vmem:[%s732_s13] sm:$0x3] }
  0x88   : > { %v351_v10 = vpop.permute.xlu0 %350  ;;  %v345_v16 = vpop.permute.xlu1 %344 }
  0x89   : > { %v353_v11 = vmul.f32 %v351_v10, %v337_v8  ;;  %v354_v12 = vmul.f32 %v351_v10, %v338_v9  ;;  %v347_v22 = vmul.f32 %v345_v16, %v337_v8 }
  0x8b   : > { %359 = vrot.lane.b32.xlu1 %v354_v12, %s656_s22  ;;  %357 = vrot.lane.b32.xlu0 %v353_v11, %s656_s22 }
  0x8c   : > { %v368_v13 = vpop.permute.xlu0 %367  ;;  %v386_v18 = vpop.permute.xlu1 %385 }
  0x8d   : > { %v370_v14 = vmul.f32 %v368_v13, %v337_v8  ;;  %v371_v15 = vmul.f32 %v368_v13, %v338_v9 }
  0x8f   : > { %374 = vrot.lane.b32.xlu1 %v370_v14, %s657_s26  ;;  %376 = vrot.lane.b32.xlu0 %v371_v15, %s657_s26 }
  0x90   : > { %v398_v17 = vpop.permute.xlu0 %397 }
  0xfd   : > { %v360_v19 = vpop.permute.xlu1 %359  ;;  %v358_v20 = vpop.permute.xlu0 %357 }
  0xfe   : > { %v362_v21 = vsel %vm361_vm0, %v358_v20, %v360_v19 }
  0xff   : > { %v364_v24 = vadd.f32 %v362_v21, %v347_v22 }
 0x101   : > { %v375_v25 = vpop.permute.xlu1 %374  ;;  %v377_v26 = vpop.permute.xlu0 %376 }
 0x102   : > { %v379_v27 = vsel %vm378_vm1, %v375_v25, %v377_v26 }
 0x103   : > { %v381_v29 = vadd.f32 %v379_v27, %v364_v24 }
 0x105   : > { %v388_v30 = vadd.f32 %v386_v18, %v381_v29 }
 0x107   : > { %vm390_vm3 = vcmp.ge.f32.partialorder %v388_v30, 0.0  ;;  %v400_v31 = vmul.f32 %v398_v17, %v388_v30 }
 0x109   : > { %v401_v32 = vsel %vm390_vm3, %v388_v30, %v400_v31 }
 0x10a   : > { %402 = vst [vmem:[%s327_s30] sm:$0xf] %v401_v32  ;;  %v434_v33 = vsel %vm433_vm2, %v401_v32, 0.0 }
 0x10b   : > { %v435_v34 = vmul.f32 %v434_v33, %v434_v33  ;;  %v437_v35 = vsel %vm436_vm4, %v434_v33, 0.0 }
 0x10c   : > { %v438_v36 = vrot.slane %v437_v35, 4 }
 0x10d   : > { %v444_v37 = vsel %vm436_vm4, %v435_v34, 0.0 }
 0x10e   : > { %v439_v38 = vadd.f32 %v438_v36, %v437_v35  ;;  %v445_v39 = vrot.slane %v444_v37, 4 }
 0x110   : > { %v440_v40 = vrot.slane %v439_v38, 2  ;;  %v446_v41 = vadd.f32 %v445_v39, %v444_v37 }
 0x112   : > { %v441_v42 = vadd.f32 %v440_v40, %v439_v38  ;;  %v447_v43 = vrot.slane %v446_v41, 2 }
 0x114   : > { %v442_v44 = vrot.slane %v441_v42, 1  ;;  %v448_v45 = vadd.f32 %v447_v43, %v446_v41 }
 0x116   : > { %v449_v46 = vrot.slane %v448_v45, 1  ;;  %v443_v48 = vadd.f32 %v442_v44, %v441_v42 }
 0x118   : > { %v450_v49 = vadd.f32 %v449_v46, %v448_v45 }
 0x11a   : > { %v453_v50 = vsel %vm452_vm5, %v443_v48, %v450_v49 }
 0x11b   : > { %v454_v51 = vadd.f32 %v453_v50, %v451_v47 }
 0x11d   : > { %455 = vst [vmem:[%s732_s13] sm:$0x3] %v454_v51 }
 0x11e PF: > { %s19_s25 = sadd.s32 1, %s652_s25   ;;  %s764_s23 = smov %s648_s24 }
 0x11f   : > { %p16_p5 = scmp.ge.s32.totalorder %s19_s25, 4   ;;  %s765_s24 = smov %s767_s4 }
 0x121   :  { %18 = sbr.rel (!%p16_p5) target bundleno = 3 (0x3), region = 97 }

// kernel: ds_conv1d_forward.3
= control target key start
LH: loop header
LB: loop body
LE: loop exit
PB: predicated region body
PF: predicated region fallthrough
CT: control target
= control target key end

     0   :  { %s511_s12 = smov 0   ;;  %s513_s13 = smov 0   ;;  %s550_s0 = inlined_call_operand.vmem [shape: f32[2,4,128], index: 0, kind: input, shape index: {}]   ;;  %s551_s1 = inlined_call_operand.vmem [shape: f32[2,6,4], index: 1, kind: input, shape index: {}]   ;;  %s552_s2 = inlined_call_operand.vmem [shape: f32[2,6,1], index: 2, kind: input, shape index: {}]   ;;  %s553_s3 = inlined_call_operand.vmem [shape: f32[2,6,128], index: 3, kind: output, shape index: {}]  }
   0x1   :  { %s515_s14 = smov 0  }
   0x2 LB: > { %s25_s15 = sadd.s32 1, %s482_s13  ;;  %p420_p0 = scmp.ge.s32.totalorder %s486_s14, 1  ;;  %s486_s14 = sphi %s515_s14, %s13_s14   ;;  %s482_s13 = sphi %s513_s13, %s555_s13   ;;  %s478_s12 = sphi %s511_s12, %s554_s12  }
   0x3   : > { %p27_p1 = scmp.ge.s32.totalorder %s25_s15, 2  ;;  %p173_p2 = scmp.lt.s32.totalorder %s486_s14, 3 }
   0x5   : > { %s557_s15 = smov (%p27_p1, %s25_s15), 0  ;;  %p174_p3 = pnand %p420_p0, %p173_p2 }
   0x6   : > { %p209_p4 = scmp.lt.s32.totalorder (!%p174_p3), %s478_s12, 1  ;;  %v488_v0 = vmov (!%p174_p3), 0.0   ;;  %vm489_vm0 = vmmov (!%p174_p3), 0   ;;  %v490_v1 = vmov (!%p174_p3), 0   ;;  %vm243_vm1 = vcmask (!%p174_p3), 1043456  }
   0x7   : > { %177 = sbr.rel (%p174_p3) target bundleno = 234 (0xea), region = 32  ;;  %431 = vmatprep.subr.mxu0 (!%p174_p3), %v488_v0  ;;  %433 = vmatprep.mubr.msk.f32.mxu0 (!%p174_p3), %vm489_vm0, %v488_v0  ;;  %vm239_vm2 = vcmask (!%p174_p3), 31744  }
   0x8   : > { %463 = vset.pattern.permute.xlu0 (!%p174_p3), %v490_v1 }
   0xe   : > { %s559_s12 = smov (!%p209_p4, %s478_s12), 1 }
   0xf   : > { %s421_s16 = sshll.u32 %s559_s12, 2  ;;  %s422_s17 = sshll.u32 %s559_s12, 3 }
  0x10   : > { %s215_s20 = scalar_lea.vmem %s550_s0, %s421_s16  ;;  %s219_s23 = scalar_lea.vmem %s551_s1, %s422_s17 }
  0x11   : > { %v232_v2 = vld [vmem:[%s215_s20] sm:$0xf]  ;;  %s223_s26 = scalar_lea.vmem %s552_s2, %s422_s17  ;;  %s230_s29 = scalar_lea.vmem %s553_s3, %s422_s17 }
  0x12   : > { %v231_v3 = vld [vmem:[%s219_s23] sm:$0x3f]  ;;  %432 = vmatpush3.msk.msra.mxu0 %vm243_vm1, %v232_v2 }
  0x13   : > { %v233_v4 = vld [vmem:[%s223_s26] sm:$0x3f]  ;;  %434 = vmatmul.mubr.msk.f32.vlgmr.msra.gmra.mrb[0].mxu0 %vm239_vm2, %v231_v3 }
  0x14   : > { %236 = vperm.xlu0 %463, %v233_v4  }
  0x93   : > { %v237_v5 = vpop.permute.xlu0 %236 }
  0xe6   : > { %v313_v6 = vpop.f32.mrb[0].mxu0 }
  0xe7   : > { %v314_v7 = vadd.f32 %v313_v6, %v237_v5  ;;  %v435_v8 = vpop.f32.mrb[1].mxu0 }
  0xe9   : > { %317 = vst [vmem:[%s230_s29] sm:$0x3f] %v314_v7 }
  0xea PF: > { %s13_s14 = sadd.s32 1, %s486_s14   ;;  %s554_s12 = smov %s482_s13 }
  0xeb   : > { %p10_p5 = scmp.ge.s32.totalorder %s13_s14, 4   ;;  %s555_s13 = smov %s557_s15 }
  0xed   :  { %12 = sbr.rel (!%p10_p5) target bundleno = 2 (0x2), region = 68 }

</bundles_post_ra>
